<compile_context>
chip_gen: v7x
topology: tpu7x:2x2x1
jax: 0.10.0
libtpu: 0.0.40
codegen_flags: <defaults>
</compile_context>

<pallas_src>
import functools

import jax
import jax.numpy as jnp
from jax import lax
from jax.experimental import pallas as pl
from jax.experimental.pallas import tpu as pltpu

_EPS = 1e-5


def _round_up(x, m):
    return ((x + m - 1) // m) * m


# -----------------------------------------------------------------------------
# Pallas kernels
# -----------------------------------------------------------------------------
def _binary_conv_kernel(p_ref, w_ref, o_ref, stats_ref):
    """One row-tile of the im2col matmul of pre-binarized (bf16 sign) data.

    p_ref:     (TM, Kp)  bf16, values in {-1, 0, +1}  (sign of input patches)
    w_ref:     (Kp, Cp)  bf16, values in {-1, 0, +1}  (sign of weights, 0-padded)
    o_ref:     (TM, Cp)  f32   un-scaled conv result (integer-valued counts)
    stats_ref: (8,  Cp)  f32   per-tile stats: row 0 = sum_c, row 1 = sumsq_c
    """
    y = jnp.dot(p_ref[...], w_ref[...], preferred_element_type=jnp.float32)
    o_ref[...] = y
    # Per-tile channel statistics for the (fused) BatchNorm reduction.
    s = jnp.sum(y, axis=0, keepdims=True)        # (1, Cp)
    sq = jnp.sum(y * y, axis=0, keepdims=True)   # (1, Cp)
    stats_ref[0:1, :] = s
    stats_ref[1:2, :] = sq
    stats_ref[2:8, :] = jnp.zeros((6, y.shape[1]), jnp.float32)


def _scale_shift_kernel(y_ref, a_ref, b_ref, o_ref):
    """Streaming BatchNorm apply: out = y * a + b (a, b folded per-channel).

    y_ref: (TM, Cp) f32, a_ref/b_ref: (1, Cp) f32, o_ref: (TM, Cp) f32
    """
    o_ref[...] = y_ref[...] * a_ref[...] + b_ref[...]


# -----------------------------------------------------------------------------
# Glue: sign + bf16 cast + im2col (plain JAX), then the two pallas_calls
# -----------------------------------------------------------------------------
def _extract_sign_patches_bf16(x, k, stride, pad):
    """sign(x) in bf16, then im2col -> (N*Ho*Wo, C*k*k) bf16, order (C, kh, kw)."""
    n, c, h, w = x.shape
    xs = jnp.sign(x).astype(jnp.bfloat16)            # ±1 / 0, exact in bf16
    xp = jnp.pad(xs, ((0, 0), (0, 0), (pad, pad), (pad, pad)))
    ho = (h + 2 * pad - k) // stride + 1
    wo = (w + 2 * pad - k) // stride + 1
    cols = []
    for i in range(k):
        for j in range(k):
            cols.append(xp[:, :, i:i + stride * ho:stride, j:j + stride * wo:stride])
    p = jnp.stack(cols, axis=0).reshape(k, k, n, c, ho, wo)
    # -> (N, Ho, Wo, C, kh, kw) -> (N*Ho*Wo, C*k*k)  [matches W.reshape(Cout, C*k*k)]
    p = p.transpose(2, 4, 5, 3, 0, 1).reshape(n * ho * wo, c * k * k)
    return p, ho, wo


@functools.partial(jax.jit, static_argnames=("kernel_size", "stride", "padding"))
def binary_conv_bn(x, weights, gamma, beta, *, kernel_size, stride, padding):
    """Forward: BatchNorm2d(HardBinaryConv(sign(x)))  (training-mode batch stats).

    x:       (N, C_in, H, W) f32 (NCHW)
    weights: (C_out*C_in*k*k, 1) f32 raw parameter
    gamma, beta: (C_out,) f32
    returns: (N, C_out, H_out, W_out) f32
    """
    n, c_in, _, _ = x.shape
    k = kernel_size
    kdim = c_in * k * k
    c_out = weights.shape[0] // kdim

    # ---- weight binarization, hoisted out of the kernel (unpadded weights) ----
    w = weights.reshape(c_out, kdim)                  # (Cout, K)
    scale = jnp.mean(jnp.abs(w))                      # global scalar scale
    w_sign = jnp.sign(w).T.astype(jnp.bfloat16)       # (K, Cout), ±1/0 exact in bf16

    # ---- pad K and C_out to lane-dense multiples of 128 (zeros contribute 0) ----
    kp = _round_up(kdim, 128)
    cp = _round_up(c_out, 128)
    w_sign = jnp.pad(w_sign, ((0, kp - kdim), (0, cp - c_out)))

    # ---- sign + bf16 BEFORE im2col so the expanded matrix is narrow ----
    patches, ho, wo = _extract_sign_patches_bf16(x, k, stride, padding)
    m = n * ho * wo

    # ---- large row tile; padded rows are zeros (harmless for conv and stats) ----
    tm = 512
    mp = _round_up(m, tm)
    patches = jnp.pad(patches, ((0, mp - m), (0, kp - kdim)))
    ntiles = mp // tm

    conv_out, stats = pl.pallas_call(
        _binary_conv_kernel,
        out_shape=(
            jax.ShapeDtypeStruct((mp, cp), jnp.float32),
            jax.ShapeDtypeStruct((ntiles * 8, cp), jnp.float32),
        ),
        grid_spec=pltpu.PrefetchScalarGridSpec(
            num_scalar_prefetch=0,
            grid=(ntiles,),
            in_specs=[
                pl.BlockSpec((tm, kp), lambda i: (i, 0)),    # streamed patches
                pl.BlockSpec((kp, cp), lambda i: (0, 0)),    # resident weights
            ],
            out_specs=(
                pl.BlockSpec((tm, cp), lambda i: (i, 0)),    # conv tile (lane-dense)
                pl.BlockSpec((8, cp), lambda i: (i, 0)),     # per-tile partial stats
            ),
        ),
        compiler_params=pltpu.CompilerParams(
            dimension_semantics=("parallel",),               # v7x megacore sharding
            vmem_limit_bytes=32 * 1024 * 1024,
        ),
    )(patches, w_sign)

    # ---- finish the BN reduction on the tiny (ntiles, Cp) partials in XLA ----
    stats = stats.reshape(ntiles, 8, cp)
    ch_sum = jnp.sum(stats[:, 0, :], axis=0)                 # (Cp,)
    ch_sumsq = jnp.sum(stats[:, 1, :], axis=0)               # (Cp,)
    mean = scale * ch_sum / m                                # stats of scale*counts
    var = (scale * scale) * ch_sumsq / m - mean * mean       # biased variance
    inv = lax.rsqrt(var + _EPS)
    gamma_p = jnp.pad(gamma, (0, cp - c_out), constant_values=1.0)
    beta_p = jnp.pad(beta, (0, cp - c_out))
    # Fold the conv scale into the BN slope: out = count * a + b
    a = (scale * gamma_p * inv).reshape(1, cp)
    b = (beta_p - mean * gamma_p * inv).reshape(1, cp)

    bn_out = pl.pallas_call(
        _scale_shift_kernel,
        out_shape=jax.ShapeDtypeStruct((mp, cp), jnp.float32),
        grid_spec=pltpu.PrefetchScalarGridSpec(
            num_scalar_prefetch=0,
            grid=(ntiles,),
            in_specs=[
                pl.BlockSpec((tm, cp), lambda i: (i, 0)),
                pl.BlockSpec((1, cp), lambda i: (0, 0)),
                pl.BlockSpec((1, cp), lambda i: (0, 0)),
            ],
            out_specs=pl.BlockSpec((tm, cp), lambda i: (i, 0)),
        ),
        compiler_params=pltpu.CompilerParams(
            dimension_semantics=("parallel",),
            vmem_limit_bytes=32 * 1024 * 1024,
        ),
    )(conv_out, a, b)

    # single slice at the very end: drop padded rows and padded channels
    out = bn_out[:m, :c_out]
    return out.reshape(n, ho, wo, c_out).transpose(0, 3, 1, 2)


# -----------------------------------------------------------------------------
# Pure-JAX reference (silent correctness check)
# -----------------------------------------------------------------------------
def _reference(x, weights, gamma, beta, kernel_size, stride, padding):
    n, c_in, _, _ = x.shape
    k = kernel_size
    c_out = weights.shape[0] // (c_in * k * k)
    w = weights.reshape(c_out, c_in, k, k)
    scale = jnp.mean(jnp.abs(w))
    wb = scale * jnp.sign(w)
    xs = jnp.sign(x)
    y = lax.conv_general_dilated(
        xs, wb, window_strides=(stride, stride),
        padding=[(padding, padding), (padding, padding)],
        dimension_numbers=("NCHW", "OIHW", "NCHW"))
    mean = jnp.mean(y, axis=(0, 2, 3), keepdims=True)
    var = jnp.mean((y - mean) ** 2, axis=(0, 2, 3), keepdims=True)
    yn = (y - mean) * lax.rsqrt(var + _EPS)
    return yn * gamma.reshape(1, c_out, 1, 1) + beta.reshape(1, c_out, 1, 1)


if __name__ == "__main__":
    # Core XNOR binary-conv + BN block of NIN at small shapes:
    # C_in=4, C_out=8, kernel=3, stride=1, padding=1
    C_in, C_out, ksize, stride, padding = 4, 8, 3, 1, 1
    N, H, W = 2, 16, 16

    key = jax.random.PRNGKey(0)
    kx, kw = jax.random.split(key)
    x = jax.random.normal(kx, (N, C_in, H, W), dtype=jnp.float32)
    weights = jax.random.uniform(kw, (C_out * C_in * ksize * ksize, 1),
                                 dtype=jnp.float32) * 0.001
    gamma = jnp.ones((C_out,), dtype=jnp.float32)
    beta = jnp.zeros((C_out,), dtype=jnp.float32)

    out = binary_conv_bn(x, weights, gamma, beta,
                         kernel_size=ksize, stride=stride, padding=padding)
    out = jax.block_until_ready(out)

    ref = _reference(x, weights, gamma, beta, ksize, stride, padding)
    assert out.shape == (N, C_out, H, W), out.shape
    err = float(jnp.max(jnp.abs(out - ref)))
    assert jnp.allclose(out, ref, rtol=1e-4, atol=1e-4), err

    print("KERNEL_OK")
</pallas_src>

<mosaic_0001>
module attributes {stable_mosaic.version = 11 : i64} {
  func.func @_binary_conv_kernel(%arg0: i32, %arg1: memref<512x128xbf16, #tpu.memory_space<vmem>>, %arg2: memref<128x128xbf16, #tpu.memory_space<vmem>>, %arg3: memref<512x128xf32, #tpu.memory_space<vmem>>, %arg4: memref<8x128xf32, #tpu.memory_space<vmem>>) attributes {dimension_semantics = [#tpu.dimension_semantics<parallel>], iteration_bounds = array<i64: 1>, scalar_prefetch = 0 : i64, scratch_operands = 0 : i64, tpu.core_type = #tpu.core_type<tc>, window_params = [{transform_indices = @transform_0, window_bounds = array<i64: 512, 128>}, {pipeline_mode = #tpu.pipeline_mode<synchronous>, transform_indices = @transform_1, window_bounds = array<i64: 128, 128>}, {transform_indices = @transform_2, window_bounds = array<i64: 512, 128>}, {transform_indices = @transform_3, window_bounds = array<i64: 8, 128>}]} {
    %c0 = arith.constant 0 : index
    %c0_0 = arith.constant 0 : index
    %0 = vector.load %arg1[%c0, %c0_0] : memref<512x128xbf16, #tpu.memory_space<vmem>>, vector<512x128xbf16>
    %c0_1 = arith.constant 0 : index
    %c0_2 = arith.constant 0 : index
    %1 = vector.load %arg2[%c0_1, %c0_2] : memref<128x128xbf16, #tpu.memory_space<vmem>>, vector<128x128xbf16>
    %cst = arith.constant dense<0.000000e+00> : vector<512x128xf32>
    %2 = tpu.matmul %0, %1, %cst {dimension_numbers = #tpu.dot_dimension_numbers<[1], [0], [0], [1], [0, 0, 1, 1], [], []>} : vector<512x128xbf16>, vector<128x128xbf16>, vector<512x128xf32> -> vector<512x128xf32>
    %c0_3 = arith.constant 0 : index
    %c0_4 = arith.constant 0 : index
    %3 = vector.load %arg3[%c0_3, %c0_4] : memref<512x128xf32, #tpu.memory_space<vmem>>, vector<512x128xf32>
    tpu.vector_store %arg3[%c0_3, %c0_4], %2 {strides = array<i32>} : memref<512x128xf32, #tpu.memory_space<vmem>>, vector<512x128xf32>,
    %cst_5 = arith.constant dense<0.000000e+00> : vector<128xf32>
    %4 = vector.multi_reduction <add>, %2, %cst_5 [0] : vector<512x128xf32> to vector<128xf32>
    %5 = vector.shape_cast %4 : vector<128xf32> to vector<1x128xf32>
    %6 = arith.mulf %2, %2 : vector<512x128xf32>
    %cst_6 = arith.constant dense<0.000000e+00> : vector<128xf32>
    %7 = vector.multi_reduction <add>, %6, %cst_6 [0] : vector<512x128xf32> to vector<128xf32>
    %8 = vector.shape_cast %7 : vector<128xf32> to vector<1x128xf32>
    %c0_7 = arith.constant 0 : index
    %c0_8 = arith.constant 0 : index
    %9 = vector.load %arg4[%c0_7, %c0_8] : memref<8x128xf32, #tpu.memory_space<vmem>>, vector<1x128xf32>
    tpu.vector_store %arg4[%c0_7, %c0_8], %5 {strides = array<i32>} : memref<8x128xf32, #tpu.memory_space<vmem>>, vector<1x128xf32>,
    %c1 = arith.constant 1 : index
    %c0_9 = arith.constant 0 : index
    %10 = vector.load %arg4[%c1, %c0_9] : memref<8x128xf32, #tpu.memory_space<vmem>>, vector<1x128xf32>
    tpu.vector_store %arg4[%c1, %c0_9], %8 {strides = array<i32>} : memref<8x128xf32, #tpu.memory_space<vmem>>, vector<1x128xf32>,
    %cst_10 = arith.constant 0.000000e+00 : f32
    %11 = vector.broadcast %cst_10 : f32 to vector<6x128xf32>
    %c2 = arith.constant 2 : index
    %c0_11 = arith.constant 0 : index
    %12 = vector.load %arg4[%c2, %c0_11] : memref<8x128xf32, #tpu.memory_space<vmem>>, vector<6x128xf32>
    tpu.vector_store %arg4[%c2, %c0_11], %11 {strides = array<i32>} : memref<8x128xf32, #tpu.memory_space<vmem>>, vector<6x128xf32>,
    return
  }
  func.func @transform_0(%arg0: i32) -> (i32, i32) {
    %c0_i32 = arith.constant 0 : i32
    %c0_i32_0 = arith.constant 0 : i32
    return %arg0, %c0_i32 : i32, i32
  }
  func.func @transform_1(%arg0: i32) -> (i32, i32) {
    %c0_i32 = arith.constant 0 : i32
    %c0_i32_0 = arith.constant 0 : i32
    %c0_i32_1 = arith.constant 0 : i32
    return %c0_i32, %c0_i32_0 : i32, i32
  }
  func.func @transform_2(%arg0: i32) -> (i32, i32) {
    %c0_i32 = arith.constant 0 : i32
    %c0_i32_0 = arith.constant 0 : i32
    return %arg0, %c0_i32 : i32, i32
  }
  func.func @transform_3(%arg0: i32) -> (i32, i32) {
    %c0_i32 = arith.constant 0 : i32
    %c0_i32_0 = arith.constant 0 : i32
    return %arg0, %c0_i32 : i32, i32
  }
}

module attributes {stable_mosaic.version = 11 : i64} {
  func.func @_scale_shift_kernel(%arg0: i32, %arg1: memref<512x128xf32, #tpu.memory_space<vmem>>, %arg2: memref<1x128xf32, #tpu.memory_space<vmem>>, %arg3: memref<1x128xf32, #tpu.memory_space<vmem>>, %arg4: memref<512x128xf32, #tpu.memory_space<vmem>>) attributes {dimension_semantics = [#tpu.dimension_semantics<parallel>], iteration_bounds = array<i64: 1>, scalar_prefetch = 0 : i64, scratch_operands = 0 : i64, tpu.core_type = #tpu.core_type<tc>, window_params = [{transform_indices = @transform_0, window_bounds = array<i64: 512, 128>}, {pipeline_mode = #tpu.pipeline_mode<synchronous>, transform_indices = @transform_1, window_bounds = array<i64: 1, 128>}, {pipeline_mode = #tpu.pipeline_mode<synchronous>, transform_indices = @transform_2, window_bounds = array<i64: 1, 128>}, {transform_indices = @transform_3, window_bounds = array<i64: 512, 128>}]} {
    %c0 = arith.constant 0 : index
    %c0_0 = arith.constant 0 : index
    %0 = vector.load %arg1[%c0, %c0_0] : memref<512x128xf32, #tpu.memory_space<vmem>>, vector<512x128xf32>
    %c0_1 = arith.constant 0 : index
    %c0_2 = arith.constant 0 : index
    %1 = vector.load %arg2[%c0_1, %c0_2] : memref<1x128xf32, #tpu.memory_space<vmem>>, vector<1x128xf32>
    %2 = vector.broadcast %1 : vector<1x128xf32> to vector<512x128xf32>
    %3 = arith.mulf %0, %2 : vector<512x128xf32>
    %c0_3 = arith.constant 0 : index
    %c0_4 = arith.constant 0 : index
    %4 = vector.load %arg3[%c0_3, %c0_4] : memref<1x128xf32, #tpu.memory_space<vmem>>, vector<1x128xf32>
    %5 = vector.broadcast %4 : vector<1x128xf32> to vector<512x128xf32>
    %6 = arith.addf %3, %5 : vector<512x128xf32>
    %c0_5 = arith.constant 0 : index
    %c0_6 = arith.constant 0 : index
    %7 = vector.load %arg4[%c0_5, %c0_6] : memref<512x128xf32, #tpu.memory_space<vmem>>, vector<512x128xf32>
    tpu.vector_store %arg4[%c0_5, %c0_6], %6 {strides = array<i32>} : memref<512x128xf32, #tpu.memory_space<vmem>>, vector<512x128xf32>,
    return
  }
  func.func @transform_0(%arg0: i32) -> (i32, i32) {
    %c0_i32 = arith.constant 0 : i32
    %c0_i32_0 = arith.constant 0 : i32
    return %arg0, %c0_i32 : i32, i32
  }
  func.func @transform_1(%arg0: i32) -> (i32, i32) {
    %c0_i32 = arith.constant 0 : i32
    %c0_i32_0 = arith.constant 0 : i32
    %c0_i32_1 = arith.constant 0 : i32
    return %c0_i32, %c0_i32_0 : i32, i32
  }
  func.func @transform_2(%arg0: i32) -> (i32, i32) {
    %c0_i32 = arith.constant 0 : i32
    %c0_i32_0 = arith.constant 0 : i32
    %c0_i32_1 = arith.constant 0 : i32
    return %c0_i32, %c0_i32_0 : i32, i32
  }
  func.func @transform_3(%arg0: i32) -> (i32, i32) {
    %c0_i32 = arith.constant 0 : i32
    %c0_i32_0 = arith.constant 0 : i32
    return %arg0, %c0_i32 : i32, i32
  }
}

</mosaic_0001>

<bundles_post_ra>
// kernel: binary_conv_bn.3
= control target key start
LH: loop header
LB: loop body
LE: loop exit
PB: predicated region body
PF: predicated region fallthrough
CT: control target
= control target key end

     0   :  { %s832_s0 = inlined_call_operand.vmem [shape: f32[512,128], index: 0, kind: input, shape index: {}]   ;;  %s833_s1 = inlined_call_operand.vmem [shape: f32[1,128], index: 1, kind: input, shape index: {}]   ;;  %s834_s2 = inlined_call_operand.vmem [shape: f32[1,128], index: 2, kind: input, shape index: {}]   ;;  %s835_s3 = inlined_call_operand.vmem [shape: f32[512,128], index: 3, kind: output, shape index: {}]  }
   0x1   :  { %v14_v0 = vld [vmem:[%s832_s0] sm:$0xff]  ;;  %v15_v4 = vld [vmem:[%s832_s0 + $0x8] sm:$0xff]  ;;  %v16_v5 = vld [vmem:[%s832_s0 + $0x10] sm:$0xff] }
   0x2   :  { %v316_v1 = vld [vmem:[%s833_s1] ss:$0 sm:$0xff]  ;;  %v17_v6 = vld [vmem:[%s832_s0 + $0x18] sm:$0xff]  ;;  %v19_v11 = vld [vmem:[%s832_s0 + $0x28] sm:$0xff] }
   0x3   :  { %v321_v2 = vld [vmem:[%s834_s2] ss:$0 sm:$0xff]  ;;  %v85_v3 = vmul.f32 %v316_v1, %v14_v0  ;;  %v86_v7 = vmul.f32 %v316_v1, %v15_v4  ;;  %v87_v8 = vmul.f32 %v316_v1, %v16_v5  ;;  %v88_v9 = vmul.f32 %v316_v1, %v17_v6  ;;  %v20_v12 = vld [vmem:[%s832_s0 + $0x30] sm:$0xff]  ;;  %v21_v17 = vld [vmem:[%s832_s0 + $0x38] sm:$0xff] }
   0x4   :  { %v18_v10 = vld [vmem:[%s832_s0 + $0x20] sm:$0xff]  ;;  %v90_v15 = vmul.f32 %v316_v1, %v19_v11  ;;  %v91_v16 = vmul.f32 %v316_v1, %v20_v12  ;;  %v23_v19 = vld [vmem:[%s832_s0 + $0x48] sm:$0xff]  ;;  %v92_v23 = vmul.f32 %v316_v1, %v21_v17  ;;  %v24_v24 = vld [vmem:[%s832_s0 + $0x50] sm:$0xff] }
   0x5   :  { %v156_v13 = vadd.f32 %v321_v2, %v85_v3  ;;  %v89_v14 = vmul.f32 %v316_v1, %v18_v10  ;;  %v22_v18 = vld [vmem:[%s832_s0 + $0x40] sm:$0xff]  ;;  %v157_v20 = vadd.f32 %v321_v2, %v86_v7  ;;  %v158_v21 = vadd.f32 %v321_v2, %v87_v8  ;;  %v25_v25 = vld [vmem:[%s832_s0 + $0x58] sm:$0xff]  ;;  %v27_v31 = vld [vmem:[%s832_s0 + $0x68] sm:$0xff] }
   0x6   :  { %v159_v22 = vadd.f32 %v321_v2, %v88_v9  ;;  %v26_v26 = vld [vmem:[%s832_s0 + $0x60] sm:$0xff]  ;;  %v161_v28 = vadd.f32 %v321_v2, %v90_v15  ;;  %v162_v29 = vadd.f32 %v321_v2, %v91_v16  ;;  %v93_v30 = vmul.f32 %v316_v1, %v22_v18  ;;  %v28_v32 = vld [vmem:[%s832_s0 + $0x70] sm:$0xff]  ;;  %v29_v33 = vld [vmem:[%s832_s0 + $0x78] sm:$0xff] }
   0x7   :  { %220 = vst [vmem:[%s835_s3] sm:$0xff] %v156_v13  ;;  %v160_v27 = vadd.f32 %v321_v2, %v89_v14  ;;  %221 = vst [vmem:[%s835_s3 + $0x8] sm:$0xff] %v157_v20  ;;  %v163_v34 = vadd.f32 %v321_v2, %v92_v23  ;;  %v94_v35 = vmul.f32 %v316_v1, %v23_v19  ;;  %v30_v38 = vld [vmem:[%s832_s0 + $0x80] sm:$0xff]  ;;  %v31_v43 = vld [vmem:[%s832_s0 + $0x88] sm:$0xff] }
   0x8   :  { %222 = vst [vmem:[%s835_s3 + $0x10] sm:$0xff] %v158_v21  ;;  %223 = vst [vmem:[%s835_s3 + $0x18] sm:$0xff] %v159_v22  ;;  %v95_v36 = vmul.f32 %v316_v1, %v24_v24  ;;  %v96_v37 = vmul.f32 %v316_v1, %v25_v25  ;;  %v164_v39 = vadd.f32 %v321_v2, %v93_v30  ;;  %v32_v44 = vld [vmem:[%s832_s0 + $0x90] sm:$0xff]  ;;  %v33_v45 = vld [vmem:[%s832_s0 + $0x98] sm:$0xff] }
   0x9   :  { %224 = vst [vmem:[%s835_s3 + $0x20] sm:$0xff] %v160_v27  ;;  %225 = vst [vmem:[%s835_s3 + $0x28] sm:$0xff] %v161_v28  ;;  %v97_v40 = vmul.f32 %v316_v1, %v26_v26  ;;  %v98_v41 = vmul.f32 %v316_v1, %v27_v31  ;;  %v99_v42 = vmul.f32 %v316_v1, %v28_v32  ;;  %v34_v50 = vld [vmem:[%s832_s0 + $0xa0] sm:$0xff]  ;;  %v35_v51 = vld [vmem:[%s832_s0 + $0xa8] sm:$0xff] }
   0xa   :  { %226 = vst [vmem:[%s835_s3 + $0x30] sm:$0xff] %v162_v29  ;;  %227 = vst [vmem:[%s835_s3 + $0x38] sm:$0xff] %v163_v34  ;;  %v165_v46 = vadd.f32 %v321_v2, %v94_v35  ;;  %v166_v47 = vadd.f32 %v321_v2, %v95_v36  ;;  %v167_v48 = vadd.f32 %v321_v2, %v96_v37  ;;  %v36_v52 = vld [vmem:[%s832_s0 + $0xb0] sm:$0xff]  ;;  %v37_v57 = vld [vmem:[%s832_s0 + $0xb8] sm:$0xff] }
   0xb   :  { %v100_v49 = vmul.f32 %v316_v1, %v29_v33  ;;  %228 = vst [vmem:[%s835_s3 + $0x40] sm:$0xff] %v164_v39  ;;  %v168_v53 = vadd.f32 %v321_v2, %v97_v40  ;;  %v169_v54 = vadd.f32 %v321_v2, %v98_v41  ;;  %v170_v55 = vadd.f32 %v321_v2, %v99_v42  ;;  %v38_v62 = vld [vmem:[%s832_s0 + $0xc0] sm:$0xff]  ;;  %v39_v5 = vld [vmem:[%s832_s0 + $0xc8] sm:$0xff]  ;;  %v40_v6 = vld [vmem:[%s832_s0 + $0xd0] sm:$0xff] }
   0xc   :  { %v101_v56 = vmul.f32 %v316_v1, %v30_v38  ;;  %229 = vst [vmem:[%s835_s3 + $0x48] sm:$0xff] %v165_v46  ;;  %230 = vst [vmem:[%s835_s3 + $0x50] sm:$0xff] %v166_v47  ;;  %v102_v59 = vmul.f32 %v316_v1, %v31_v43  ;;  %v103_v60 = vmul.f32 %v316_v1, %v32_v44  ;;  %v41_v7 = vld [vmem:[%s832_s0 + $0xd8] sm:$0xff]  ;;  %v42_v12 = vld [vmem:[%s832_s0 + $0xe0] sm:$0xff] }
   0xd   :  { %231 = vst [vmem:[%s835_s3 + $0x58] sm:$0xff] %v167_v48  ;;  %v171_v58 = vadd.f32 %v321_v2, %v100_v49  ;;  %v104_v61 = vmul.f32 %v316_v1, %v33_v45  ;;  %232 = vst [vmem:[%s835_s3 + $0x60] sm:$0xff] %v168_v53  ;;  %v105_v0 = vmul.f32 %v316_v1, %v34_v50  ;;  %v43_v13 = vld [vmem:[%s832_s0 + $0xe8] sm:$0xff]  ;;  %v44_v14 = vld [vmem:[%s832_s0 + $0xf0] sm:$0xff] }
   0xe   :  { %233 = vst [vmem:[%s835_s3 + $0x68] sm:$0xff] %v169_v54  ;;  %234 = vst [vmem:[%s835_s3 + $0x70] sm:$0xff] %v170_v55  ;;  %v172_v63 = vadd.f32 %v321_v2, %v101_v56  ;;  %v106_v3 = vmul.f32 %v316_v1, %v35_v51  ;;  %v107_v4 = vmul.f32 %v316_v1, %v36_v52  ;;  %v45_v19 = vld [vmem:[%s832_s0 + $0xf8] sm:$0xff]  ;;  %v46_v24 = vld [vmem:[%s832_s0 + $0x100] sm:$0xff] }
   0xf   :  { %235 = vst [vmem:[%s835_s3 + $0x78] sm:$0xff] %v171_v58  ;;  %v173_v8 = vadd.f32 %v321_v2, %v102_v59  ;;  %v174_v9 = vadd.f32 %v321_v2, %v103_v60  ;;  %v175_v10 = vadd.f32 %v321_v2, %v104_v61  ;;  %v108_v11 = vmul.f32 %v316_v1, %v37_v57  ;;  %v47_v29 = vld [vmem:[%s832_s0 + $0x108] sm:$0xff]  ;;  %v48_v30 = vld [vmem:[%s832_s0 + $0x110] sm:$0xff]  ;;  %v49_v31 = vld [vmem:[%s832_s0 + $0x118] sm:$0xff] }
  0x10   :  { %236 = vst [vmem:[%s835_s3 + $0x80] sm:$0xff] %v172_v63  ;;  %v176_v15 = vadd.f32 %v321_v2, %v105_v0  ;;  %v177_v16 = vadd.f32 %v321_v2, %v106_v3  ;;  %v178_v17 = vadd.f32 %v321_v2, %v107_v4  ;;  %v109_v18 = vmul.f32 %v316_v1, %v38_v62  ;;  %v50_v36 = vld [vmem:[%s832_s0 + $0x120] sm:$0xff]  ;;  %v51_v37 = vld [vmem:[%s832_s0 + $0x128] sm:$0xff]  ;;  %v52_v38 = vld [vmem:[%s832_s0 + $0x130] sm:$0xff] }
  0x11   :  { %237 = vst [vmem:[%s835_s3 + $0x88] sm:$0xff] %v173_v8  ;;  %238 = vst [vmem:[%s835_s3 + $0x90] sm:$0xff] %v174_v9  ;;  %v179_v20 = vadd.f32 %v321_v2, %v108_v11  ;;  %v110_v21 = vmul.f32 %v316_v1, %v39_v5  ;;  %v111_v22 = vmul.f32 %v316_v1, %v40_v6  ;;  %v53_v43 = vld [vmem:[%s832_s0 + $0x138] sm:$0xff]  ;;  %v54_v48 = vld [vmem:[%s832_s0 + $0x140] sm:$0xff] }
  0x12   :  { %239 = vst [vmem:[%s835_s3 + $0x98] sm:$0xff] %v175_v10  ;;  %v112_v23 = vmul.f32 %v316_v1, %v41_v7  ;;  %240 = vst [vmem:[%s835_s3 + $0xa0] sm:$0xff] %v176_v15  ;;  %v180_v25 = vadd.f32 %v321_v2, %v109_v18  ;;  %v113_v26 = vmul.f32 %v316_v1, %v42_v12  ;;  %v55_v53 = vld [vmem:[%s832_s0 + $0x148] sm:$0xff]  ;;  %v56_v54 = vld [vmem:[%s832_s0 + $0x150] sm:$0xff] }
  0x13   :  { %241 = vst [vmem:[%s835_s3 + $0xa8] sm:$0xff] %v177_v16  ;;  %242 = vst [vmem:[%s835_s3 + $0xb0] sm:$0xff] %v178_v17  ;;  %v114_v27 = vmul.f32 %v316_v1, %v43_v13  ;;  %v115_v28 = vmul.f32 %v316_v1, %v44_v14  ;;  %v181_v32 = vadd.f32 %v321_v2, %v110_v21  ;;  %v57_v55 = vld [vmem:[%s832_s0 + $0x158] sm:$0xff]  ;;  %v58_v60 = vld [vmem:[%s832_s0 + $0x160] sm:$0xff] }
  0x14   :  { %243 = vst [vmem:[%s835_s3 + $0xb8] sm:$0xff] %v179_v20  ;;  %v182_v33 = vadd.f32 %v321_v2, %v111_v22  ;;  %v183_v34 = vadd.f32 %v321_v2, %v112_v23  ;;  %v116_v35 = vmul.f32 %v316_v1, %v45_v19  ;;  %244 = vst [vmem:[%s835_s3 + $0xc0] sm:$0xff] %v180_v25  ;;  %v59_v61 = vld [vmem:[%s832_s0 + $0x168] sm:$0xff]  ;;  %v60_v62 = vld [vmem:[%s832_s0 + $0x170] sm:$0xff] }
  0x15   :  { %v184_v39 = vadd.f32 %v321_v2, %v113_v26  ;;  %v185_v40 = vadd.f32 %v321_v2, %v114_v27  ;;  %v186_v41 = vadd.f32 %v321_v2, %v115_v28  ;;  %v117_v42 = vmul.f32 %v316_v1, %v46_v24  ;;  %245 = vst [vmem:[%s835_s3 + $0xc8] sm:$0xff] %v181_v32  ;;  %v61_v5 = vld [vmem:[%s832_s0 + $0x178] sm:$0xff]  ;;  %v62_v10 = vld [vmem:[%s832_s0 + $0x180] sm:$0xff]  ;;  %v63_v15 = vld [vmem:[%s832_s0 + $0x188] sm:$0xff] }
  0x16   :  { %246 = vst [vmem:[%s835_s3 + $0xd0] sm:$0xff] %v182_v33  ;;  %247 = vst [vmem:[%s835_s3 + $0xd8] sm:$0xff] %v183_v34  ;;  %v187_v44 = vadd.f32 %v321_v2, %v116_v35  ;;  %v118_v45 = vmul.f32 %v316_v1, %v47_v29  ;;  %v119_v46 = vmul.f32 %v316_v1, %v48_v30  ;;  %v64_v16 = vld [vmem:[%s832_s0 + $0x190] sm:$0xff]  ;;  %v65_v17 = vld [vmem:[%s832_s0 + $0x198] sm:$0xff] }
  0x17   :  { %v120_v47 = vmul.f32 %v316_v1, %v49_v31  ;;  %248 = vst [vmem:[%s835_s3 + $0xe0] sm:$0xff] %v184_v39  ;;  %249 = vst [vmem:[%s835_s3 + $0xe8] sm:$0xff] %v185_v40  ;;  %v188_v49 = vadd.f32 %v321_v2, %v117_v42  ;;  %v121_v50 = vmul.f32 %v316_v1, %v50_v36  ;;  %v66_v22 = vld [vmem:[%s832_s0 + $0x1a0] sm:$0xff]  ;;  %v67_v23 = vld [vmem:[%s832_s0 + $0x1a8] sm:$0xff] }
  0x18   :  { %250 = vst [vmem:[%s835_s3 + $0xf0] sm:$0xff] %v186_v41  ;;  %v122_v51 = vmul.f32 %v316_v1, %v51_v37  ;;  %v123_v52 = vmul.f32 %v316_v1, %v52_v38  ;;  %251 = vst [vmem:[%s835_s3 + $0xf8] sm:$0xff] %v187_v44  ;;  %v189_v56 = vadd.f32 %v321_v2, %v118_v45  ;;  %v68_v24 = vld [vmem:[%s832_s0 + $0x1b0] sm:$0xff]  ;;  %v69_v29 = vld [vmem:[%s832_s0 + $0x1b8] sm:$0xff] }
  0x19   :  { %v190_v57 = vadd.f32 %v321_v2, %v119_v46  ;;  %v191_v58 = vadd.f32 %v321_v2, %v120_v47  ;;  %v124_v59 = vmul.f32 %v316_v1, %v53_v43  ;;  %252 = vst [vmem:[%s835_s3 + $0x100] sm:$0xff] %v188_v49  ;;  %v192_v63 = vadd.f32 %v321_v2, %v121_v50  ;;  %v70_v34 = vld [vmem:[%s832_s0 + $0x1c0] sm:$0xff]  ;;  %v71_v39 = vld [vmem:[%s832_s0 + $0x1c8] sm:$0xff]  ;;  %v72_v40 = vld [vmem:[%s832_s0 + $0x1d0] sm:$0xff] }
  0x1a   :  { %v193_v0 = vadd.f32 %v321_v2, %v122_v51  ;;  %v194_v3 = vadd.f32 %v321_v2, %v123_v52  ;;  %v125_v4 = vmul.f32 %v316_v1, %v54_v48  ;;  %253 = vst [vmem:[%s835_s3 + $0x108] sm:$0xff] %v189_v56  ;;  %v126_v7 = vmul.f32 %v316_v1, %v55_v53  ;;  %v73_v41 = vld [vmem:[%s832_s0 + $0x1d8] sm:$0xff]  ;;  %v74_v46 = vld [vmem:[%s832_s0 + $0x1e0] sm:$0xff]  ;;  %v75_v47 = vld [vmem:[%s832_s0 + $0x1e8] sm:$0xff] }
  0x1b   :  { %254 = vst [vmem:[%s835_s3 + $0x110] sm:$0xff] %v190_v57  ;;  %255 = vst [vmem:[%s835_s3 + $0x118] sm:$0xff] %v191_v58  ;;  %v195_v6 = vadd.f32 %v321_v2, %v124_v59  ;;  %v127_v8 = vmul.f32 %v316_v1, %v56_v54  ;;  %v128_v9 = vmul.f32 %v316_v1, %v57_v55  ;;  %v76_v48 = vld [vmem:[%s832_s0 + $0x1f0] sm:$0xff]  ;;  %v77_v53 = vld [vmem:[%s832_s0 + $0x1f8] sm:$0xff] }
  0x1c   :  { %256 = vst [vmem:[%s835_s3 + $0x120] sm:$0xff] %v192_v63  ;;  %257 = vst [vmem:[%s835_s3 + $0x128] sm:$0xff] %v193_v0  ;;  %v196_v11 = vadd.f32 %v321_v2, %v125_v4  ;;  %v129_v12 = vmul.f32 %v316_v1, %v58_v60  ;;  %v130_v13 = vmul.f32 %v316_v1, %v59_v61 }
  0x1d   :  { %258 = vst [vmem:[%s835_s3 + $0x130] sm:$0xff] %v194_v3  ;;  %v131_v14 = vmul.f32 %v316_v1, %v60_v62  ;;  %259 = vst [vmem:[%s835_s3 + $0x138] sm:$0xff] %v195_v6  ;;  %v197_v18 = vadd.f32 %v321_v2, %v126_v7  ;;  %v198_v19 = vadd.f32 %v321_v2, %v127_v8 }
  0x1e   :  { %v199_v20 = vadd.f32 %v321_v2, %v128_v9  ;;  %v132_v21 = vmul.f32 %v316_v1, %v61_v5  ;;  %260 = vst [vmem:[%s835_s3 + $0x140] sm:$0xff] %v196_v11  ;;  %v200_v25 = vadd.f32 %v321_v2, %v129_v12  ;;  %v201_v26 = vadd.f32 %v321_v2, %v130_v13 }
  0x1f   :  { %v202_v27 = vadd.f32 %v321_v2, %v131_v14  ;;  %v133_v28 = vmul.f32 %v316_v1, %v62_v10  ;;  %261 = vst [vmem:[%s835_s3 + $0x148] sm:$0xff] %v197_v18  ;;  %262 = vst [vmem:[%s835_s3 + $0x150] sm:$0xff] %v198_v19  ;;  %v134_v31 = vmul.f32 %v316_v1, %v63_v15 }
  0x20   :  { %263 = vst [vmem:[%s835_s3 + $0x158] sm:$0xff] %v199_v20  ;;  %v203_v30 = vadd.f32 %v321_v2, %v132_v21  ;;  %v135_v32 = vmul.f32 %v316_v1, %v64_v16  ;;  %v136_v33 = vmul.f32 %v316_v1, %v65_v17  ;;  %264 = vst [vmem:[%s835_s3 + $0x160] sm:$0xff] %v200_v25 }
  0x21   :  { %265 = vst [vmem:[%s835_s3 + $0x168] sm:$0xff] %v201_v26  ;;  %266 = vst [vmem:[%s835_s3 + $0x170] sm:$0xff] %v202_v27  ;;  %v204_v35 = vadd.f32 %v321_v2, %v133_v28  ;;  %v137_v36 = vmul.f32 %v316_v1, %v66_v22  ;;  %v138_v37 = vmul.f32 %v316_v1, %v67_v23 }
  0x22   :  { %v139_v38 = vmul.f32 %v316_v1, %v68_v24  ;;  %267 = vst [vmem:[%s835_s3 + $0x178] sm:$0xff] %v203_v30  ;;  %v205_v42 = vadd.f32 %v321_v2, %v134_v31  ;;  %v206_v43 = vadd.f32 %v321_v2, %v135_v32  ;;  %v207_v44 = vadd.f32 %v321_v2, %v136_v33 }
  0x23   :  { %v140_v45 = vmul.f32 %v316_v1, %v69_v29  ;;  %268 = vst [vmem:[%s835_s3 + $0x180] sm:$0xff] %v204_v35  ;;  %v208_v49 = vadd.f32 %v321_v2, %v137_v36  ;;  %v209_v50 = vadd.f32 %v321_v2, %v138_v37  ;;  %v141_v52 = vmul.f32 %v316_v1, %v70_v34 }
  0x24   :  { %v210_v51 = vadd.f32 %v321_v2, %v139_v38  ;;  %269 = vst [vmem:[%s835_s3 + $0x188] sm:$0xff] %v205_v42  ;;  %270 = vst [vmem:[%s835_s3 + $0x190] sm:$0xff] %v206_v43  ;;  %v142_v55 = vmul.f32 %v316_v1, %v71_v39  ;;  %v143_v56 = vmul.f32 %v316_v1, %v72_v40 }
  0x25   :  { %271 = vst [vmem:[%s835_s3 + $0x198] sm:$0xff] %v207_v44  ;;  %v211_v54 = vadd.f32 %v321_v2, %v140_v45  ;;  %v144_v57 = vmul.f32 %v316_v1, %v73_v41  ;;  %272 = vst [vmem:[%s835_s3 + $0x1a0] sm:$0xff] %v208_v49  ;;  %v212_v58 = vadd.f32 %v321_v2, %v141_v52 }
  0x26   :  { %273 = vst [vmem:[%s835_s3 + $0x1a8] sm:$0xff] %v209_v50  ;;  %274 = vst [vmem:[%s835_s3 + $0x1b0] sm:$0xff] %v210_v51  ;;  %v145_v59 = vmul.f32 %v316_v1, %v74_v46  ;;  %v146_v60 = vmul.f32 %v316_v1, %v75_v47  ;;  %v147_v61 = vmul.f32 %v316_v1, %v76_v48 }
  0x27   :  { %275 = vst [vmem:[%s835_s3 + $0x1b8] sm:$0xff] %v211_v54  ;;  %v213_v62 = vadd.f32 %v321_v2, %v142_v55  ;;  %v214_v63 = vadd.f32 %v321_v2, %v143_v56  ;;  %v215_v0 = vadd.f32 %v321_v2, %v144_v57  ;;  %v148_v3 = vmul.f32 %v316_v1, %v77_v53 }
  0x28   :  { %276 = vst [vmem:[%s835_s3 + $0x1c0] sm:$0xff] %v212_v58  ;;  %v216_v4 = vadd.f32 %v321_v2, %v145_v59  ;;  %v217_v5 = vadd.f32 %v321_v2, %v146_v60  ;;  %v218_v6 = vadd.f32 %v321_v2, %v147_v61 }
  0x29   :  { %277 = vst [vmem:[%s835_s3 + $0x1c8] sm:$0xff] %v213_v62  ;;  %278 = vst [vmem:[%s835_s3 + $0x1d0] sm:$0xff] %v214_v63  ;;  %v219_v1 = vadd.f32 %v321_v2, %v148_v3 }
  0x2a   :  { %279 = vst [vmem:[%s835_s3 + $0x1d8] sm:$0xff] %v215_v0  ;;  %280 = vst [vmem:[%s835_s3 + $0x1e0] sm:$0xff] %v216_v4 }
  0x2b   :  { %281 = vst [vmem:[%s835_s3 + $0x1e8] sm:$0xff] %v217_v5  ;;  %282 = vst [vmem:[%s835_s3 + $0x1f0] sm:$0xff] %v218_v6 }
  0x2c   :  { %283 = vst [vmem:[%s835_s3 + $0x1f8] sm:$0xff] %v219_v1 }

// kernel: binary_conv_bn.2
= control target key start
LH: loop header
LB: loop body
LE: loop exit
PB: predicated region body
PF: predicated region fallthrough
CT: control target
= control target key end

     0   :  { %s1651_s1 = inlined_call_operand.vmem [shape: bf16[128,128], index: 1, kind: input, shape index: {}]   ;;  %s1652_s0 = inlined_call_operand.vmem [shape: bf16[512,128], index: 0, kind: input, shape index: {}]   ;;  %s1653_s2 = inlined_call_operand.vmem [shape: f32[512,128], index: 2, kind: output, shape index: {0}]   ;;  %s1654_s3 = inlined_call_operand.vmem [shape: f32[8,128], index: 3, kind: output, shape index: {1}]  }
   0x1   :  { %v1077_v0 = vld [vmem:[%s1651_s1] sm:$0xff]   ;;  %v1078_v1 = vld [vmem:[%s1651_s1 + $0x8] sm:$0xff]   ;;  %v1079_v2 = vld [vmem:[%s1651_s1 + $0x10] sm:$0xff]  }
   0x2   :  { %980 = vmatprep.subr.bf16.mxu0 %v1077_v0  ;;  %1060 = vmatprep.subr.bf16.mxu1 %v1077_v0  ;;  %v1080_v3 = vld [vmem:[%s1651_s1 + $0x18] sm:$0xff]   ;;  %v1085_v4 = vld [vmem:[%s1652_s0] sm:$0xff]   ;;  %v1082_v6 = vld [vmem:[%s1651_s1 + $0x28] sm:$0xff]  }
   0x3   :  { %981 = vmatpush3.bf16.msra.mxu0 %v1077_v0  ;;  %1068 = vmatpush3.bf16.msra.mxu1 %v1077_v0  ;;  %v1081_v5 = vld [vmem:[%s1651_s1 + $0x20] sm:$0xff]   ;;  %v1083_v7 = vld [vmem:[%s1651_s1 + $0x30] sm:$0xff]   ;;  %v1084_v8 = vld [vmem:[%s1651_s1 + $0x38] sm:$0xff]  }
   0x4   :  { %982 = vmatprep.subr.bf16.mxu0 %v1078_v1  ;;  %1061 = vmatprep.subr.bf16.mxu1 %v1078_v1  ;;  %v1101_v9 = vld [vmem:[%s1652_s0 + $0x80] sm:$0xff]   ;;  %v1086_v10 = vld [vmem:[%s1652_s0 + $0x8] sm:$0xff]   ;;  %v1087_v11 = vld [vmem:[%s1652_s0 + $0x10] sm:$0xff]  }
   0x5   :  { %996 = vmatprep.mubr.bf16.mxu0 %v1085_v4  ;;  %1028 = vmatprep.mubr.bf16.mxu1 %v1101_v9  ;;  %v1102_v12 = vld [vmem:[%s1652_s0 + $0x88] sm:$0xff]   ;;  %v1103_v13 = vld [vmem:[%s1652_s0 + $0x90] sm:$0xff]   ;;  %v1088_v14 = vld [vmem:[%s1652_s0 + $0x18] sm:$0xff]  }
   0x6   :  { %v1089_v15 = vld [vmem:[%s1652_s0 + $0x20] sm:$0xff]   ;;  %v1104_v16 = vld [vmem:[%s1652_s0 + $0x98] sm:$0xff]   ;;  %v1090_v18 = vld [vmem:[%s1652_s0 + $0x28] sm:$0xff]  }
   0x7   :  { %983 = vmatpush3.bf16.msra.mxu0 %v1078_v1  ;;  %1069 = vmatpush3.bf16.msra.mxu1 %v1078_v1  ;;  %v1105_v17 = vld [vmem:[%s1652_s0 + $0xa0] sm:$0xff]   ;;  %v1106_v19 = vld [vmem:[%s1652_s0 + $0xa8] sm:$0xff]   ;;  %v1091_v20 = vld [vmem:[%s1652_s0 + $0x30] sm:$0xff]  }
   0x8   :  { %984 = vmatprep.subr.bf16.mxu0 %v1079_v2  ;;  %1062 = vmatprep.subr.bf16.mxu1 %v1079_v2  ;;  %v1107_v21 = vld [vmem:[%s1652_s0 + $0xb0] sm:$0xff]   ;;  %v1092_v22 = vld [vmem:[%s1652_s0 + $0x38] sm:$0xff]   ;;  %v1093_v24 = vld [vmem:[%s1652_s0 + $0x40] sm:$0xff]  }
   0x9   :  { %v1108_v23 = vld [vmem:[%s1652_s0 + $0xb8] sm:$0xff]   ;;  %v1109_v25 = vld [vmem:[%s1652_s0 + $0xc0] sm:$0xff]   ;;  %v1094_v26 = vld [vmem:[%s1652_s0 + $0x48] sm:$0xff]  }
   0xa   :  { %v1110_v27 = vld [vmem:[%s1652_s0 + $0xc8] sm:$0xff]   ;;  %v1095_v28 = vld [vmem:[%s1652_s0 + $0x50] sm:$0xff]   ;;  %v1096_v30 = vld [vmem:[%s1652_s0 + $0x58] sm:$0xff]  }
   0xb   :  { %985 = vmatpush3.bf16.msra.mxu0 %v1079_v2  ;;  %1070 = vmatpush3.bf16.msra.mxu1 %v1079_v2  ;;  %v1111_v29 = vld [vmem:[%s1652_s0 + $0xd0] sm:$0xff]   ;;  %v1112_v31 = vld [vmem:[%s1652_s0 + $0xd8] sm:$0xff]   ;;  %v1097_v32 = vld [vmem:[%s1652_s0 + $0x60] sm:$0xff]  }
   0xc   :  { %986 = vmatprep.subr.bf16.mxu0 %v1080_v3  ;;  %1063 = vmatprep.subr.bf16.mxu1 %v1080_v3  ;;  %v1113_v33 = vld [vmem:[%s1652_s0 + $0xe0] sm:$0xff]   ;;  %v1098_v34 = vld [vmem:[%s1652_s0 + $0x68] sm:$0xff]   ;;  %v1099_v36 = vld [vmem:[%s1652_s0 + $0x70] sm:$0xff]  }
   0xd   :  { %v1114_v35 = vld [vmem:[%s1652_s0 + $0xe8] sm:$0xff]   ;;  %v1115_v37 = vld [vmem:[%s1652_s0 + $0xf0] sm:$0xff]   ;;  %v1100_v38 = vld [vmem:[%s1652_s0 + $0x78] sm:$0xff]  }
   0xe   :  { %v1116_v39 = vld [vmem:[%s1652_s0 + $0xf8] sm:$0xff]  }
   0xf   :  { %987 = vmatpush3.bf16.msra.mxu0 %v1080_v3  ;;  %1071 = vmatpush3.bf16.msra.mxu1 %v1080_v3 }
  0x10   :  { %988 = vmatprep.subr.bf16.mxu0 %v1081_v5  ;;  %1064 = vmatprep.subr.bf16.mxu1 %v1081_v5 }
  0x13   :  { %989 = vmatpush3.bf16.msra.mxu0 %v1081_v5  ;;  %1072 = vmatpush3.bf16.msra.mxu1 %v1081_v5 }
  0x14   :  { %990 = vmatprep.subr.bf16.mxu0 %v1082_v6  ;;  %1065 = vmatprep.subr.bf16.mxu1 %v1082_v6 }
  0x17   :  { %991 = vmatpush3.bf16.msra.mxu0 %v1082_v6  ;;  %1073 = vmatpush3.bf16.msra.mxu1 %v1082_v6 }
  0x18   :  { %992 = vmatprep.subr.bf16.mxu0 %v1083_v7  ;;  %1066 = vmatprep.subr.bf16.mxu1 %v1083_v7 }
  0x1b   :  { %993 = vmatpush3.bf16.msra.mxu0 %v1083_v7  ;;  %1074 = vmatpush3.bf16.msra.mxu1 %v1083_v7 }
  0x1c   :  { %994 = vmatprep.subr.bf16.mxu0 %v1084_v8  ;;  %1067 = vmatprep.subr.bf16.mxu1 %v1084_v8 }
  0x1f   :  { %995 = vmatpush3.bf16.msra.mxu0 %v1084_v8  ;;  %1075 = vmatpush3.bf16.msra.mxu1 %v1084_v8 }
  0x22   :  { %997 = vmatmul.mubr.bf16.vlgmr.msra.gmra.mrb[0].mxu0 %v1086_v10  ;;  %1029 = vmatmul.mubr.bf16.vlgmr.msra.gmra.mrb[0].mxu1 %v1102_v12 }
  0x23   :  { %1000 = vmatprep.mubr.bf16.mxu0 %v1087_v11  ;;  %1032 = vmatprep.mubr.bf16.mxu1 %v1103_v13 }
  0x2a   :  { %1001 = vmatmul.mubr.bf16.gmra.mrb[4].mxu0 %v1088_v14  ;;  %1033 = vmatmul.mubr.bf16.gmra.mrb[4].mxu1 %v1104_v16 }
  0x2b   :  { %1004 = vmatprep.mubr.bf16.mxu0 %v1089_v15  ;;  %1036 = vmatprep.mubr.bf16.mxu1 %v1105_v17  ;;  %v1117_v15 = vmov 0.0  }
  0x2c   :  { %891 = vst [vmem:[%s1654_s3 + $0x2] sm:$0x3f] %v1117_v15 }
  0x32   :  { %1005 = vmatmul.mubr.bf16.gmra.mrb[8].mxu0 %v1090_v18  ;;  %1037 = vmatmul.mubr.bf16.gmra.mrb[8].mxu1 %v1106_v19 }
  0x33   :  { %1008 = vmatprep.mubr.bf16.mxu0 %v1091_v20  ;;  %1040 = vmatprep.mubr.bf16.mxu1 %v1107_v21 }
  0x3a   :  { %1009 = vmatmul.mubr.bf16.gmra.mrb[12].mxu0 %v1092_v22  ;;  %1041 = vmatmul.mubr.bf16.gmra.mrb[12].mxu1 %v1108_v23 }
  0x3b   :  { %1012 = vmatprep.mubr.bf16.mxu0 %v1093_v24  ;;  %1044 = vmatprep.mubr.bf16.mxu1 %v1109_v25 }
  0x42   :  { %1013 = vmatmul.mubr.bf16.gmra.mrb[16].mxu0 %v1094_v26  ;;  %1045 = vmatmul.mubr.bf16.gmra.mrb[16].mxu1 %v1110_v27 }
  0x43   :  { %1016 = vmatprep.mubr.bf16.mxu0 %v1095_v28  ;;  %1048 = vmatprep.mubr.bf16.mxu1 %v1111_v29 }
  0x4a   :  { %1017 = vmatmul.mubr.bf16.gmra.mrb[20].mxu0 %v1096_v30  ;;  %1049 = vmatmul.mubr.bf16.gmra.mrb[20].mxu1 %v1112_v31 }
  0x4b   :  { %1020 = vmatprep.mubr.bf16.mxu0 %v1097_v32  ;;  %1052 = vmatprep.mubr.bf16.mxu1 %v1113_v33 }
  0x52   :  { %1021 = vmatmul.mubr.bf16.gmra.mrb[24].mxu0 %v1098_v34  ;;  %1053 = vmatmul.mubr.bf16.gmra.mrb[24].mxu1 %v1114_v35 }
  0x53   :  { %1024 = vmatprep.mubr.bf16.mxu0 %v1099_v36  ;;  %1056 = vmatprep.mubr.bf16.mxu1 %v1115_v37 }
  0x5a   :  { %1025 = vmatmul.mubr.bf16.gmra.mrb[28].mxu0 %v1100_v38  ;;  %1057 = vmatmul.mubr.bf16.gmra.mrb[28].mxu1 %v1116_v39 }
  0xf5   :  { %v998_v40 = vpop.f32.mrb[0].mxu0  ;;  %v1258_v41 = vpop.f32.mrb[0].mxu1 }
  0xf6   :  { %625 = vst [vmem:[%s1653_s2 + $0x10] sm:$0xff] %v998_v40  ;;  %v368_v42 = vpop.f32.mrb[1].mxu0  ;;  %657 = vst [vmem:[%s1653_s2 + $0x110] sm:$0xff] %v1258_v41  ;;  %v1267_v43 = vpop.f32.mrb[1].mxu1  ;;  %v758_v51 = vmul.f32 %v998_v40, %v998_v40 }
  0xf7   :  { %623 = vst [vmem:[%s1653_s2] sm:$0xff] %v368_v42  ;;  %v999_v44 = vpop.f32.mrb[2].mxu0  ;;  %655 = vst [vmem:[%s1653_s2 + $0x100] sm:$0xff] %v1267_v43  ;;  %v1276_v45 = vpop.f32.mrb[2].mxu1  ;;  %v756_v48 = vmul.f32 %v368_v42, %v368_v42 }
  0xf8   :  { %626 = vst [vmem:[%s1653_s2 + $0x18] sm:$0xff] %v999_v44  ;;  %v371_v46 = vpop.f32.mrb[3].mxu0  ;;  %658 = vst [vmem:[%s1653_s2 + $0x118] sm:$0xff] %v1276_v45  ;;  %v1285_v47 = vpop.f32.mrb[3].mxu1  ;;  %v759_v54 = vmul.f32 %v999_v44, %v999_v44 }
  0xf9   :  { %624 = vst [vmem:[%s1653_s2 + $0x8] sm:$0xff] %v371_v46  ;;  %v687_v49 = vadd.f32 %v371_v46, %v368_v42  ;;  %v757_v50 = vmul.f32 %v371_v46, %v371_v46  ;;  %656 = vst [vmem:[%s1653_s2 + $0x108] sm:$0xff] %v1285_v47 }
  0xfb   :  { %v688_v52 = vadd.f32 %v998_v40, %v687_v49  ;;  %v820_v53 = vadd.f32 %v757_v50, %v756_v48 }
  0xfd   :  { %v821_v55 = vadd.f32 %v820_v53, %v758_v51  ;;  %v1002_v56 = vpop.f32.mrb[4].mxu0  ;;  %v689_v57 = vadd.f32 %v999_v44, %v688_v52  ;;  %v1294_v58 = vpop.f32.mrb[4].mxu1 }
  0xfe   :  { %629 = vst [vmem:[%s1653_s2 + $0x30] sm:$0xff] %v1002_v56  ;;  %v384_v59 = vpop.f32.mrb[5].mxu0  ;;  %661 = vst [vmem:[%s1653_s2 + $0x130] sm:$0xff] %v1294_v58  ;;  %v1303_v60 = vpop.f32.mrb[5].mxu1  ;;  %v762_v7 = vmul.f32 %v1002_v56, %v1002_v56 }
  0xff   :  { %627 = vst [vmem:[%s1653_s2 + $0x20] sm:$0xff] %v384_v59  ;;  %v690_v61 = vadd.f32 %v689_v57, %v384_v59  ;;  %v760_v62 = vmul.f32 %v384_v59, %v384_v59  ;;  %v822_v63 = vadd.f32 %v821_v55, %v759_v54  ;;  %v1003_v0 = vpop.f32.mrb[6].mxu0  ;;  %659 = vst [vmem:[%s1653_s2 + $0x120] sm:$0xff] %v1303_v60  ;;  %v1312_v1 = vpop.f32.mrb[6].mxu1 }
 0x100   :  { %630 = vst [vmem:[%s1653_s2 + $0x38] sm:$0xff] %v1003_v0  ;;  %v387_v2 = vpop.f32.mrb[7].mxu0  ;;  %662 = vst [vmem:[%s1653_s2 + $0x138] sm:$0xff] %v1312_v1  ;;  %v1321_v3 = vpop.f32.mrb[7].mxu1  ;;  %v763_v10 = vmul.f32 %v1003_v0, %v1003_v0 }
 0x101   :  { %v823_v4 = vadd.f32 %v822_v63, %v760_v62  ;;  %628 = vst [vmem:[%s1653_s2 + $0x28] sm:$0xff] %v387_v2  ;;  %v691_v5 = vadd.f32 %v690_v61, %v387_v2  ;;  %v761_v6 = vmul.f32 %v387_v2, %v387_v2  ;;  %660 = vst [vmem:[%s1653_s2 + $0x128] sm:$0xff] %v1321_v3 }
 0x103   :  { %v692_v8 = vadd.f32 %v1002_v56, %v691_v5  ;;  %v824_v9 = vadd.f32 %v823_v4, %v761_v6 }
 0x105   :  { %v825_v11 = vadd.f32 %v824_v9, %v762_v7  ;;  %v1006_v12 = vpop.f32.mrb[8].mxu0  ;;  %v693_v13 = vadd.f32 %v1003_v0, %v692_v8  ;;  %v1330_v14 = vpop.f32.mrb[8].mxu1 }
 0x106   :  { %633 = vst [vmem:[%s1653_s2 + $0x50] sm:$0xff] %v1006_v12  ;;  %v400_v16 = vpop.f32.mrb[9].mxu0  ;;  %665 = vst [vmem:[%s1653_s2 + $0x150] sm:$0xff] %v1330_v14  ;;  %v1342_v17 = vpop.f32.mrb[9].mxu1  ;;  %v766_v28 = vmul.f32 %v1006_v12, %v1006_v12 }
 0x107   :  { %631 = vst [vmem:[%s1653_s2 + $0x40] sm:$0xff] %v400_v16  ;;  %v694_v18 = vadd.f32 %v693_v13, %v400_v16  ;;  %v764_v19 = vmul.f32 %v400_v16, %v400_v16  ;;  %v826_v20 = vadd.f32 %v825_v11, %v763_v10  ;;  %v1007_v21 = vpop.f32.mrb[10].mxu0  ;;  %663 = vst [vmem:[%s1653_s2 + $0x140] sm:$0xff] %v1342_v17  ;;  %v1351_v22 = vpop.f32.mrb[10].mxu1 }
 0x108   :  { %634 = vst [vmem:[%s1653_s2 + $0x58] sm:$0xff] %v1007_v21  ;;  %v403_v23 = vpop.f32.mrb[11].mxu0  ;;  %666 = vst [vmem:[%s1653_s2 + $0x158] sm:$0xff] %v1351_v22  ;;  %v1360_v24 = vpop.f32.mrb[11].mxu1  ;;  %v767_v31 = vmul.f32 %v1007_v21, %v1007_v21 }
 0x109   :  { %v827_v25 = vadd.f32 %v826_v20, %v764_v19  ;;  %632 = vst [vmem:[%s1653_s2 + $0x48] sm:$0xff] %v403_v23  ;;  %v695_v26 = vadd.f32 %v694_v18, %v403_v23  ;;  %v765_v27 = vmul.f32 %v403_v23, %v403_v23  ;;  %664 = vst [vmem:[%s1653_s2 + $0x148] sm:$0xff] %v1360_v24 }
 0x10b   :  { %v696_v29 = vadd.f32 %v1006_v12, %v695_v26  ;;  %v828_v30 = vadd.f32 %v827_v25, %v765_v27 }
 0x10d   :  { %v829_v32 = vadd.f32 %v828_v30, %v766_v28  ;;  %v1010_v33 = vpop.f32.mrb[12].mxu0  ;;  %v697_v34 = vadd.f32 %v1007_v21, %v696_v29  ;;  %v1369_v35 = vpop.f32.mrb[12].mxu1 }
 0x10e   :  { %637 = vst [vmem:[%s1653_s2 + $0x70] sm:$0xff] %v1010_v33  ;;  %v416_v36 = vpop.f32.mrb[13].mxu0  ;;  %669 = vst [vmem:[%s1653_s2 + $0x170] sm:$0xff] %v1369_v35  ;;  %v1378_v37 = vpop.f32.mrb[13].mxu1  ;;  %v770_v52 = vmul.f32 %v1010_v33, %v1010_v33 }
 0x10f   :  { %635 = vst [vmem:[%s1653_s2 + $0x60] sm:$0xff] %v416_v36  ;;  %v698_v38 = vadd.f32 %v697_v34, %v416_v36  ;;  %v768_v39 = vmul.f32 %v416_v36, %v416_v36  ;;  %v830_v40 = vadd.f32 %v829_v32, %v767_v31  ;;  %v1011_v42 = vpop.f32.mrb[14].mxu0  ;;  %667 = vst [vmem:[%s1653_s2 + $0x160] sm:$0xff] %v1378_v37  ;;  %v1387_v44 = vpop.f32.mrb[14].mxu1 }
 0x110   :  { %638 = vst [vmem:[%s1653_s2 + $0x78] sm:$0xff] %v1011_v42  ;;  %v419_v46 = vpop.f32.mrb[15].mxu0  ;;  %670 = vst [vmem:[%s1653_s2 + $0x178] sm:$0xff] %v1387_v44  ;;  %v1396_v48 = vpop.f32.mrb[15].mxu1  ;;  %v771_v55 = vmul.f32 %v1011_v42, %v1011_v42 }
 0x111   :  { %v831_v49 = vadd.f32 %v830_v40, %v768_v39  ;;  %636 = vst [vmem:[%s1653_s2 + $0x68] sm:$0xff] %v419_v46  ;;  %v699_v50 = vadd.f32 %v698_v38, %v419_v46  ;;  %v769_v51 = vmul.f32 %v419_v46, %v419_v46  ;;  %668 = vst [vmem:[%s1653_s2 + $0x168] sm:$0xff] %v1396_v48 }
 0x113   :  { %v700_v53 = vadd.f32 %v1010_v33, %v699_v50  ;;  %v832_v54 = vadd.f32 %v831_v49, %v769_v51 }
 0x115   :  { %v833_v56 = vadd.f32 %v832_v54, %v770_v52  ;;  %v1014_v57 = vpop.f32.mrb[16].mxu0  ;;  %v701_v59 = vadd.f32 %v1011_v42, %v700_v53  ;;  %v1405_v61 = vpop.f32.mrb[16].mxu1 }
 0x116   :  { %641 = vst [vmem:[%s1653_s2 + $0x90] sm:$0xff] %v1014_v57  ;;  %v432_v62 = vpop.f32.mrb[17].mxu0  ;;  %673 = vst [vmem:[%s1653_s2 + $0x190] sm:$0xff] %v1405_v61  ;;  %v1414_v63 = vpop.f32.mrb[17].mxu1  ;;  %v774_v12 = vmul.f32 %v1014_v57, %v1014_v57 }
 0x117   :  { %639 = vst [vmem:[%s1653_s2 + $0x80] sm:$0xff] %v432_v62  ;;  %v702_v0 = vadd.f32 %v701_v59, %v432_v62  ;;  %v772_v2 = vmul.f32 %v432_v62, %v432_v62  ;;  %v834_v4 = vadd.f32 %v833_v56, %v771_v55  ;;  %v1015_v5 = vpop.f32.mrb[18].mxu0  ;;  %671 = vst [vmem:[%s1653_s2 + $0x180] sm:$0xff] %v1414_v63  ;;  %v1423_v6 = vpop.f32.mrb[18].mxu1 }
 0x118   :  { %642 = vst [vmem:[%s1653_s2 + $0x98] sm:$0xff] %v1015_v5  ;;  %v435_v7 = vpop.f32.mrb[19].mxu0  ;;  %674 = vst [vmem:[%s1653_s2 + $0x198] sm:$0xff] %v1423_v6  ;;  %v1432_v8 = vpop.f32.mrb[19].mxu1  ;;  %v775_v16 = vmul.f32 %v1015_v5, %v1015_v5 }
 0x119   :  { %v835_v9 = vadd.f32 %v834_v4, %v772_v2  ;;  %640 = vst [vmem:[%s1653_s2 + $0x88] sm:$0xff] %v435_v7  ;;  %v703_v10 = vadd.f32 %v702_v0, %v435_v7  ;;  %v773_v11 = vmul.f32 %v435_v7, %v435_v7  ;;  %672 = vst [vmem:[%s1653_s2 + $0x188] sm:$0xff] %v1432_v8 }
 0x11b   :  { %v704_v13 = vadd.f32 %v1014_v57, %v703_v10  ;;  %v836_v15 = vadd.f32 %v835_v9, %v773_v11 }
 0x11d   :  { %v837_v18 = vadd.f32 %v836_v15, %v774_v12  ;;  %v1018_v19 = vpop.f32.mrb[20].mxu0  ;;  %v705_v20 = vadd.f32 %v1015_v5, %v704_v13  ;;  %v1441_v21 = vpop.f32.mrb[20].mxu1 }
 0x11e   :  { %645 = vst [vmem:[%s1653_s2 + $0xb0] sm:$0xff] %v1018_v19  ;;  %v448_v23 = vpop.f32.mrb[21].mxu0  ;;  %677 = vst [vmem:[%s1653_s2 + $0x1b0] sm:$0xff] %v1441_v21  ;;  %v1450_v25 = vpop.f32.mrb[21].mxu1  ;;  %v778_v38 = vmul.f32 %v1018_v19, %v1018_v19 }
 0x11f   :  { %643 = vst [vmem:[%s1653_s2 + $0xa0] sm:$0xff] %v448_v23  ;;  %v706_v26 = vadd.f32 %v705_v20, %v448_v23  ;;  %v776_v27 = vmul.f32 %v448_v23, %v448_v23  ;;  %v838_v28 = vadd.f32 %v837_v18, %v775_v16  ;;  %v1019_v29 = vpop.f32.mrb[22].mxu0  ;;  %675 = vst [vmem:[%s1653_s2 + $0x1a0] sm:$0xff] %v1450_v25  ;;  %v1459_v30 = vpop.f32.mrb[22].mxu1 }
 0x120   :  { %646 = vst [vmem:[%s1653_s2 + $0xb8] sm:$0xff] %v1019_v29  ;;  %v451_v31 = vpop.f32.mrb[23].mxu0  ;;  %678 = vst [vmem:[%s1653_s2 + $0x1b8] sm:$0xff] %v1459_v30  ;;  %v1468_v32 = vpop.f32.mrb[23].mxu1  ;;  %v779_v42 = vmul.f32 %v1019_v29, %v1019_v29 }
 0x121   :  { %v839_v33 = vadd.f32 %v838_v28, %v776_v27  ;;  %644 = vst [vmem:[%s1653_s2 + $0xa8] sm:$0xff] %v451_v31  ;;  %v707_v34 = vadd.f32 %v706_v26, %v451_v31  ;;  %v777_v36 = vmul.f32 %v451_v31, %v451_v31  ;;  %676 = vst [vmem:[%s1653_s2 + $0x1a8] sm:$0xff] %v1468_v32 }
 0x123   :  { %v708_v39 = vadd.f32 %v1018_v19, %v707_v34  ;;  %v840_v40 = vadd.f32 %v839_v33, %v777_v36 }
 0x125   :  { %v841_v46 = vadd.f32 %v840_v40, %v778_v38  ;;  %v1022_v49 = vpop.f32.mrb[24].mxu0  ;;  %v709_v50 = vadd.f32 %v1019_v29, %v708_v39  ;;  %v1477_v51 = vpop.f32.mrb[24].mxu1 }
 0x126   :  { %649 = vst [vmem:[%s1653_s2 + $0xd0] sm:$0xff] %v1022_v49  ;;  %v464_v52 = vpop.f32.mrb[25].mxu0  ;;  %681 = vst [vmem:[%s1653_s2 + $0x1d0] sm:$0xff] %v1477_v51  ;;  %v1486_v53 = vpop.f32.mrb[25].mxu1  ;;  %v782_v7 = vmul.f32 %v1022_v49, %v1022_v49 }
 0x127   :  { %647 = vst [vmem:[%s1653_s2 + $0xc0] sm:$0xff] %v464_v52  ;;  %v710_v54 = vadd.f32 %v709_v50, %v464_v52  ;;  %v780_v55 = vmul.f32 %v464_v52, %v464_v52  ;;  %v842_v56 = vadd.f32 %v841_v46, %v779_v42  ;;  %v1023_v57 = vpop.f32.mrb[26].mxu0  ;;  %679 = vst [vmem:[%s1653_s2 + $0x1c0] sm:$0xff] %v1486_v53  ;;  %v1495_v59 = vpop.f32.mrb[26].mxu1 }
 0x128   :  { %650 = vst [vmem:[%s1653_s2 + $0xd8] sm:$0xff] %v1023_v57  ;;  %v467_v62 = vpop.f32.mrb[27].mxu0  ;;  %682 = vst [vmem:[%s1653_s2 + $0x1d8] sm:$0xff] %v1495_v59  ;;  %v1504_v0 = vpop.f32.mrb[27].mxu1  ;;  %v783_v11 = vmul.f32 %v1023_v57, %v1023_v57  ;;  %v788_v50 = vmul.f32 %v1267_v43, %v1267_v43 }
 0x129   :  { %v843_v2 = vadd.f32 %v842_v56, %v780_v55  ;;  %648 = vst [vmem:[%s1653_s2 + $0xc8] sm:$0xff] %v467_v62  ;;  %v711_v4 = vadd.f32 %v710_v54, %v467_v62  ;;  %v781_v5 = vmul.f32 %v467_v62, %v467_v62  ;;  %680 = vst [vmem:[%s1653_s2 + $0x1c8] sm:$0xff] %v1504_v0 }
 0x12a   :  { %v790_v62 = vmul.f32 %v1258_v41, %v1258_v41 }
 0x12b   :  { %v712_v9 = vadd.f32 %v1022_v49, %v711_v4  ;;  %v844_v10 = vadd.f32 %v843_v2, %v781_v5  ;;  %v791_v5 = vmul.f32 %v1276_v45, %v1276_v45 }
 0x12d   :  { %v845_v12 = vadd.f32 %v844_v10, %v782_v7  ;;  %v1026_v13 = vpop.f32.mrb[28].mxu0  ;;  %v713_v15 = vadd.f32 %v1023_v57, %v712_v9  ;;  %v1513_v16 = vpop.f32.mrb[28].mxu1  ;;  %v789_v57 = vmul.f32 %v1285_v47, %v1285_v47 }
 0x12e   :  { %653 = vst [vmem:[%s1653_s2 + $0xf0] sm:$0xff] %v1026_v13  ;;  %v480_v18 = vpop.f32.mrb[29].mxu0  ;;  %685 = vst [vmem:[%s1653_s2 + $0x1f0] sm:$0xff] %v1513_v16  ;;  %v1522_v19 = vpop.f32.mrb[29].mxu1  ;;  %v786_v38 = vmul.f32 %v1026_v13, %v1026_v13 }
 0x12f   :  { %651 = vst [vmem:[%s1653_s2 + $0xe0] sm:$0xff] %v480_v18  ;;  %v714_v20 = vadd.f32 %v713_v15, %v480_v18  ;;  %v784_v23 = vmul.f32 %v480_v18, %v480_v18  ;;  %v846_v26 = vadd.f32 %v845_v12, %v783_v11  ;;  %v1027_v27 = vpop.f32.mrb[30].mxu0  ;;  %683 = vst [vmem:[%s1653_s2 + $0x1e0] sm:$0xff] %v1522_v19  ;;  %v1531_v28 = vpop.f32.mrb[30].mxu1 }
 0x130   :  { %654 = vst [vmem:[%s1653_s2 + $0xf8] sm:$0xff] %v1027_v27  ;;  %v483_v29 = vpop.f32.mrb[31].mxu0  ;;  %686 = vst [vmem:[%s1653_s2 + $0x1f8] sm:$0xff] %v1531_v28  ;;  %v1540_v31 = vpop.f32.mrb[31].mxu1  ;;  %v787_v42 = vmul.f32 %v1027_v27, %v1027_v27 }
 0x131   :  { %v847_v33 = vadd.f32 %v846_v26, %v784_v23  ;;  %652 = vst [vmem:[%s1653_s2 + $0xe8] sm:$0xff] %v483_v29  ;;  %v715_v34 = vadd.f32 %v714_v20, %v483_v29  ;;  %v785_v36 = vmul.f32 %v483_v29, %v483_v29  ;;  %684 = vst [vmem:[%s1653_s2 + $0x1e8] sm:$0xff] %v1540_v31 }
 0x133   :  { %v716_v39 = vadd.f32 %v1026_v13, %v715_v34  ;;  %v848_v40 = vadd.f32 %v847_v33, %v785_v36  ;;  %v793_v13 = vmul.f32 %v1321_v3, %v1321_v3  ;;  %v797_v33 = vmul.f32 %v1360_v24, %v1360_v24 }
 0x135   :  { %v849_v46 = vadd.f32 %v848_v40, %v786_v38  ;;  %v717_v49 = vadd.f32 %v1027_v27, %v716_v39 }
 0x137   :  { %v718_v52 = vadd.f32 %v717_v49, %v1267_v43  ;;  %v850_v54 = vadd.f32 %v849_v46, %v787_v42  ;;  %v792_v43 = vmul.f32 %v1303_v60, %v1303_v60  ;;  %v801_v49 = vmul.f32 %v1396_v48, %v1396_v48 }
 0x139   :  { %v851_v55 = vadd.f32 %v850_v54, %v788_v50  ;;  %v719_v56 = vadd.f32 %v718_v52, %v1285_v47 }
 0x13b   :  { %v720_v2 = vadd.f32 %v1258_v41, %v719_v56  ;;  %v852_v4 = vadd.f32 %v851_v55, %v789_v57  ;;  %v794_v41 = vmul.f32 %v1294_v58, %v1294_v58 }
 0x13d   :  { %v853_v7 = vadd.f32 %v852_v4, %v790_v62  ;;  %v721_v9 = vadd.f32 %v1276_v45, %v720_v2  ;;  %v795_v45 = vmul.f32 %v1312_v1, %v1312_v1  ;;  %v805_v2 = vmul.f32 %v1432_v8, %v1432_v8 }
 0x13f   :  { %v722_v10 = vadd.f32 %v721_v9, %v1303_v60  ;;  %v854_v11 = vadd.f32 %v853_v7, %v791_v5  ;;  %v796_v60 = vmul.f32 %v1342_v17, %v1342_v17 }
 0x141   :  { %v855_v12 = vadd.f32 %v854_v11, %v792_v43  ;;  %v723_v47 = vadd.f32 %v722_v10, %v1321_v3 }
 0x143   :  { %v724_v15 = vadd.f32 %v1294_v58, %v723_v47  ;;  %v856_v18 = vadd.f32 %v855_v12, %v793_v13  ;;  %v798_v58 = vmul.f32 %v1330_v14, %v1330_v14  ;;  %v809_v12 = vmul.f32 %v1468_v32, %v1468_v32 }
 0x145   :  { %v857_v20 = vadd.f32 %v856_v18, %v794_v41  ;;  %v725_v23 = vadd.f32 %v1312_v1, %v724_v15  ;;  %v799_v1 = vmul.f32 %v1351_v22, %v1351_v22 }
 0x147   :  { %v726_v26 = vadd.f32 %v725_v23, %v1342_v17  ;;  %v858_v27 = vadd.f32 %v857_v20, %v795_v45  ;;  %v800_v17 = vmul.f32 %v1378_v37, %v1378_v37  ;;  %v813_v23 = vmul.f32 %v1504_v0, %v1504_v0 }
 0x149   :  { %v859_v29 = vadd.f32 %v858_v27, %v796_v60  ;;  %v727_v3 = vadd.f32 %v726_v26, %v1360_v24 }
 0x14b   :  { %v728_v34 = vadd.f32 %v1330_v14, %v727_v3  ;;  %v860_v36 = vadd.f32 %v859_v29, %v797_v33  ;;  %v802_v14 = vmul.f32 %v1369_v35, %v1369_v35 }
 0x14d   :  { %v861_v38 = vadd.f32 %v860_v36, %v798_v58  ;;  %v729_v39 = vadd.f32 %v1351_v22, %v728_v34  ;;  %v803_v22 = vmul.f32 %v1387_v44, %v1387_v44  ;;  %v817_v34 = vmul.f32 %v1540_v31, %v1540_v31 }
 0x14f   :  { %v730_v40 = vadd.f32 %v729_v39, %v1378_v37  ;;  %v862_v42 = vadd.f32 %v861_v38, %v799_v1  ;;  %v804_v37 = vmul.f32 %v1414_v63, %v1414_v63 }
 0x151   :  { %v863_v46 = vadd.f32 %v862_v42, %v800_v17  ;;  %v731_v24 = vadd.f32 %v730_v40, %v1396_v48 }
 0x153   :  { %v732_v50 = vadd.f32 %v1369_v35, %v731_v24  ;;  %v864_v52 = vadd.f32 %v863_v46, %v801_v49  ;;  %v806_v35 = vmul.f32 %v1405_v61, %v1405_v61 }
 0x155   :  { %v865_v54 = vadd.f32 %v864_v52, %v802_v14  ;;  %v733_v55 = vadd.f32 %v1387_v44, %v732_v50  ;;  %v807_v44 = vmul.f32 %v1423_v6, %v1423_v6 }
 0x157   :  { %v734_v56 = vadd.f32 %v733_v55, %v1414_v63  ;;  %v866_v57 = vadd.f32 %v865_v54, %v803_v22  ;;  %v808_v63 = vmul.f32 %v1450_v25, %v1450_v25 }
 0x159   :  { %v867_v62 = vadd.f32 %v866_v57, %v804_v37  ;;  %v735_v48 = vadd.f32 %v734_v56, %v1432_v8 }
 0x15b   :  { %v736_v4 = vadd.f32 %v1405_v61, %v735_v48  ;;  %v868_v5 = vadd.f32 %v867_v62, %v805_v2  ;;  %v810_v61 = vmul.f32 %v1441_v21, %v1441_v21 }
 0x15d   :  { %v869_v7 = vadd.f32 %v868_v5, %v806_v35  ;;  %v737_v9 = vadd.f32 %v1423_v6, %v736_v4  ;;  %v811_v6 = vmul.f32 %v1459_v30, %v1459_v30 }
 0x15f   :  { %v738_v43 = vadd.f32 %v737_v9, %v1450_v25  ;;  %v870_v10 = vadd.f32 %v869_v7, %v807_v44  ;;  %v812_v25 = vmul.f32 %v1486_v53, %v1486_v53 }
 0x161   :  { %v871_v11 = vadd.f32 %v870_v10, %v808_v63  ;;  %v739_v8 = vadd.f32 %v738_v43, %v1468_v32 }
 0x163   :  { %v740_v47 = vadd.f32 %v1441_v21, %v739_v8  ;;  %v872_v13 = vadd.f32 %v871_v11, %v809_v12  ;;  %v814_v21 = vmul.f32 %v1477_v51, %v1477_v51 }
 0x165   :  { %v873_v41 = vadd.f32 %v872_v13, %v810_v61  ;;  %v741_v15 = vadd.f32 %v1459_v30, %v740_v47  ;;  %v815_v30 = vmul.f32 %v1495_v59, %v1495_v59 }
 0x167   :  { %v742_v18 = vadd.f32 %v741_v15, %v1486_v53  ;;  %v874_v45 = vadd.f32 %v873_v41, %v811_v6  ;;  %v816_v53 = vmul.f32 %v1522_v19, %v1522_v19 }
 0x169   :  { %v875_v20 = vadd.f32 %v874_v45, %v812_v25  ;;  %v743_v32 = vadd.f32 %v742_v18, %v1504_v0 }
 0x16b   :  { %v744_v60 = vadd.f32 %v1477_v51, %v743_v32  ;;  %v876_v26 = vadd.f32 %v875_v20, %v813_v23  ;;  %v818_v51 = vmul.f32 %v1513_v16, %v1513_v16 }
 0x16d   :  { %v877_v27 = vadd.f32 %v876_v26, %v814_v21  ;;  %v745_v29 = vadd.f32 %v1495_v59, %v744_v60  ;;  %v819_v59 = vmul.f32 %v1531_v28, %v1531_v28 }
 0x16f   :  { %v746_v3 = vadd.f32 %v745_v29, %v1522_v19  ;;  %v878_v33 = vadd.f32 %v877_v27, %v815_v30 }
 0x171   :  { %v879_v58 = vadd.f32 %v878_v33, %v816_v53  ;;  %v747_v0 = vadd.f32 %v746_v3, %v1540_v31 }
 0x173   :  { %v748_v36 = vadd.f32 %v1513_v16, %v747_v0  ;;  %v880_v1 = vadd.f32 %v879_v58, %v817_v34 }
 0x175   :  { %v749_v38 = vadd.f32 %v1531_v28, %v748_v36  ;;  %v881_v39 = vadd.f32 %v880_v1, %v818_v51 }
 0x177   :  { %v750_v19 = vrot.slane %v749_v38, 4  ;;  %v882_v17 = vadd.f32 %v881_v39, %v819_v59 }
 0x179   :  { %v751_v40 = vadd.f32 %v750_v19, %v749_v38  ;;  %v883_v42 = vrot.slane %v882_v17, 4 }
 0x17b   :  { %v752_v46 = vrot.slane %v751_v40, 2  ;;  %v884_v24 = vadd.f32 %v883_v42, %v882_v17 }
 0x17d   :  { %v753_v49 = vadd.f32 %v752_v46, %v751_v40  ;;  %v885_v31 = vrot.slane %v884_v24, 2 }
 0x17f   :  { %v754_v14 = vrot.slane %v753_v49, 1  ;;  %v886_v50 = vadd.f32 %v885_v31, %v884_v24 }
 0x181   :  { %v755_v52 = vadd.f32 %v754_v14, %v753_v49  ;;  %v887_v22 = vrot.slane %v886_v50, 1 }
 0x183   :  { %v888_v16 = vadd.f32 %v887_v22, %v886_v50  ;;  %889 = vst [vmem:[%s1654_s3] sm:$0x1] %v755_v52 }
 0x185   :  { %890 = vst [vmem:[%s1654_s3 + $0x1] sm:$0x1] %v888_v16 }

</bundles_post_ra>
